<compile_context>
chip_gen: v5e
topology: v5e:2x2
jax: 0.10.0
libtpu: 0.0.40
codegen_flags: <defaults>
</compile_context>

<pallas_src>
import functools

import jax
import jax.numpy as jnp
from jax.experimental import pallas as pl
from jax.experimental.pallas import tpu as pltpu


def _srm_fused_kernel(x_ref, w_ref, o_ref, patch_ref, *, wr, kh, kw):
    """One (batch, row-block) grid step.

    x_ref:     (1, C, Lt)  flattened zero-padded halo tile, Lt = (tile_h + kh) * wr
    w_ref:     (O, K)      K = kh*kw*C, ordered (ky, kx, c)
    o_ref:     (1, O, TQ)  TQ = tile_h * wr  (channel-major, lane-dense)
    patch_ref: (K, TQ)     VMEM scratch for the fused im2col
    """
    c = x_ref.shape[1]
    tq = patch_ref.shape[1]

    # Fused im2col: 25 static (C, TQ) slice copies; tap (ky, kx) of every output
    # position is a pure 1-D shift of the flattened padded rows.
    for ky in range(kh):
        for kx in range(kw):
            off = ky * wr + kx
            k0 = (ky * kw + kx) * c
            patch_ref[k0:k0 + c, :] = x_ref[0, :, off:off + tq]

    # Flipped MXU matmul: (O, K) @ (K, TQ) -> lane-dense (O, TQ) output block.
    o_ref[0, :, :] = jnp.dot(
        w_ref[...], patch_ref[...], preferred_element_type=jnp.float32
    ).astype(o_ref.dtype)


def srm_conv2d(x, weight, *, tile_h=None, target_tile_q=2048):
    """x: (N, C, H, W), weight: (O, C, 5, 5) -> (N, O, H, W); stride=1, padding=2."""
    N, C, H, W = x.shape
    O, Cw, KH, KW = weight.shape
    assert C == Cw and KH == 5 and KW == 5
    pad = KH // 2                          # = 2 -> "same" spatial size

    Wr = W + 2 * pad                       # padded row length (keeps 4 pad cols/row)
    if tile_h is None:
        tile_h = max(1, min(H, target_tile_q // Wr))
    n_hb = -(-H // tile_h)                 # row blocks per image
    H_pad = n_hb * tile_h
    TQ = tile_h * Wr                       # output positions (incl. pad cols) per step
    Lt = (tile_h + KH) * Wr                # tile rows + 4 halo rows + 1 slack row
    K = KH * KW * C
    G = N * n_hb

    # ---- wrapper glue: one cheap pass over the 3-channel input ----
    # zero-pad: 2 top/left/right; enough bottom rows for the last halo tile + slack.
    xp = jnp.pad(x, ((0, 0), (0, 0), (pad, H_pad - H + pad + 1), (pad, pad)))
    # Overlapping halo row-blocks (duplicates ~KH/tile_h of the input) so the kernel
    # can use plain auto-pipelined BlockSpecs.
    tiles = jnp.stack(
        [xp[:, :, hb * tile_h: hb * tile_h + tile_h + KH, :] for hb in range(n_hb)],
        axis=1,
    ).reshape(G, C, Lt)

    # weight[o, c, ky, kx] -> w_mat[o, (ky*KW + kx)*C + c]   (matches patch row order)
    w_mat = jnp.transpose(weight, (0, 2, 3, 1)).reshape(O, K).astype(x.dtype)

    kernel = functools.partial(_srm_fused_kernel, wr=Wr, kh=KH, kw=KW)

    out = pl.pallas_call(
        kernel,
        out_shape=jax.ShapeDtypeStruct((G, O, TQ), x.dtype),
        grid_spec=pltpu.PrefetchScalarGridSpec(
            num_scalar_prefetch=0,
            grid=(G,),
            in_specs=[
                pl.BlockSpec((1, C, Lt), lambda g: (g, 0, 0)),   # halo tile per step
                pl.BlockSpec((O, K), lambda g: (0, 0)),          # weights, VMEM-resident
            ],
            out_specs=pl.BlockSpec((1, O, TQ), lambda g: (g, 0, 0)),
            scratch_shapes=[pltpu.VMEM((K, TQ), x.dtype)],       # fused-im2col scratch
        ),
        compiler_params=pltpu.CompilerParams(
            dimension_semantics=("parallel",)),                  # megacore / v7x 2-TC
    )(tiles, w_mat)

    # (G, O, TQ) is already channel-major: interleave row blocks and drop the 4 pad
    # columns per row.  Single fused XLA copy (no-op transpose when n_hb == 1).
    y = out.reshape(N, n_hb, O, tile_h, Wr)
    y = jnp.transpose(y, (0, 2, 1, 3, 4)).reshape(N, O, H_pad, Wr)
    return y[:, :, :H, :W]


def make_srm_params(key):
    """Deterministic synthetic SRM parameters (shapes match the PyTorch module)."""
    base = jax.random.normal(key, (30, 1, 5, 5), dtype=jnp.float32)
    weight = jnp.repeat(base, 3, axis=1)            # (30, 3, 5, 5)
    bias = jnp.zeros((30,), dtype=jnp.float32)      # unused in forward
    return weight, bias


if __name__ == "__main__":
    key = jax.random.PRNGKey(0)
    k_w, k_x = jax.random.split(key)

    weight, _bias = make_srm_params(k_w)
    x = jax.random.normal(k_x, (2, 3, 16, 16), dtype=jnp.float32)  # NCHW, C=3 per weight

    # tile_h=8 -> 2 row blocks per image, 4 grid steps (exercises halo + interleave).
    fn = jax.jit(functools.partial(srm_conv2d, tile_h=8))
    y = jax.block_until_ready(fn(x, weight))

    # reference check against XLA conv
    y_ref = jax.lax.conv_general_dilated(
        x, weight, window_strides=(1, 1), padding=((2, 2), (2, 2)),
        dimension_numbers=("NCHW", "OIHW", "NCHW"))
    assert y.shape == (2, 30, 16, 16), y.shape
    assert jnp.allclose(y, y_ref, atol=1e-3, rtol=1e-3), float(jnp.max(jnp.abs(y - y_ref)))

    print("KERNEL_OK")
</pallas_src>

<mosaic_0001>
module attributes {stable_mosaic.version = 11 : i64} {
  func.func @_srm_fused_kernel(%arg0: i32, %arg1: memref<1x3x260xf32, #tpu.memory_space<vmem>>, %arg2: memref<30x75xf32, #tpu.memory_space<vmem>>, %arg3: memref<1x30x160xf32, #tpu.memory_space<vmem>>, %arg4: memref<75x160xf32, #tpu.memory_space<vmem>>) attributes {dimension_semantics = [#tpu.dimension_semantics<parallel>], iteration_bounds = array<i64: 4>, scalar_prefetch = 0 : i64, scratch_operands = 1 : i64, tpu.core_type = #tpu.core_type<tc>, window_params = [{transform_indices = @transform_0, window_bounds = array<i64: 1, 3, 260>}, {pipeline_mode = #tpu.pipeline_mode<synchronous>, transform_indices = @transform_1, window_bounds = array<i64: 30, 75>}, {transform_indices = @transform_2, window_bounds = array<i64: 1, 30, 160>}]} {
    %c0 = arith.constant 0 : index
    %c0_0 = arith.constant 0 : index
    %c0_1 = arith.constant 0 : index
    %0 = vector.load %arg1[%c0, %c0_0, %c0_1] : memref<1x3x260xf32, #tpu.memory_space<vmem>>, vector<1x3x160xf32>
    %1 = vector.shape_cast %0 : vector<1x3x160xf32> to vector<3x160xf32>
    %c0_2 = arith.constant 0 : index
    %c0_3 = arith.constant 0 : index
    %2 = vector.load %arg4[%c0_2, %c0_3] : memref<75x160xf32, #tpu.memory_space<vmem>>, vector<3x160xf32>
    tpu.vector_store %arg4[%c0_2, %c0_3], %1 {strides = array<i32>} : memref<75x160xf32, #tpu.memory_space<vmem>>, vector<3x160xf32>,
    %c0_4 = arith.constant 0 : index
    %c0_5 = arith.constant 0 : index
    %c1 = arith.constant 1 : index
    %3 = vector.load %arg1[%c0_4, %c0_5, %c1] : memref<1x3x260xf32, #tpu.memory_space<vmem>>, vector<1x3x160xf32>
    %4 = vector.shape_cast %3 : vector<1x3x160xf32> to vector<3x160xf32>
    %c3 = arith.constant 3 : index
    %c0_6 = arith.constant 0 : index
    %5 = vector.load %arg4[%c3, %c0_6] : memref<75x160xf32, #tpu.memory_space<vmem>>, vector<3x160xf32>
    tpu.vector_store %arg4[%c3, %c0_6], %4 {strides = array<i32>} : memref<75x160xf32, #tpu.memory_space<vmem>>, vector<3x160xf32>,
    %c0_7 = arith.constant 0 : index
    %c0_8 = arith.constant 0 : index
    %c2 = arith.constant 2 : index
    %6 = vector.load %arg1[%c0_7, %c0_8, %c2] : memref<1x3x260xf32, #tpu.memory_space<vmem>>, vector<1x3x160xf32>
    %7 = vector.shape_cast %6 : vector<1x3x160xf32> to vector<3x160xf32>
    %c6 = arith.constant 6 : index
    %c0_9 = arith.constant 0 : index
    %8 = vector.load %arg4[%c6, %c0_9] : memref<75x160xf32, #tpu.memory_space<vmem>>, vector<3x160xf32>
    tpu.vector_store %arg4[%c6, %c0_9], %7 {strides = array<i32>} : memref<75x160xf32, #tpu.memory_space<vmem>>, vector<3x160xf32>,
    %c0_10 = arith.constant 0 : index
    %c0_11 = arith.constant 0 : index
    %c3_12 = arith.constant 3 : index
    %9 = vector.load %arg1[%c0_10, %c0_11, %c3_12] : memref<1x3x260xf32, #tpu.memory_space<vmem>>, vector<1x3x160xf32>
    %10 = vector.shape_cast %9 : vector<1x3x160xf32> to vector<3x160xf32>
    %c9 = arith.constant 9 : index
    %c0_13 = arith.constant 0 : index
    %11 = vector.load %arg4[%c9, %c0_13] : memref<75x160xf32, #tpu.memory_space<vmem>>, vector<3x160xf32>
    tpu.vector_store %arg4[%c9, %c0_13], %10 {strides = array<i32>} : memref<75x160xf32, #tpu.memory_space<vmem>>, vector<3x160xf32>,
    %c0_14 = arith.constant 0 : index
    %c0_15 = arith.constant 0 : index
    %c4 = arith.constant 4 : index
    %12 = vector.load %arg1[%c0_14, %c0_15, %c4] : memref<1x3x260xf32, #tpu.memory_space<vmem>>, vector<1x3x160xf32>
    %13 = vector.shape_cast %12 : vector<1x3x160xf32> to vector<3x160xf32>
    %c12 = arith.constant 12 : index
    %c0_16 = arith.constant 0 : index
    %14 = vector.load %arg4[%c12, %c0_16] : memref<75x160xf32, #tpu.memory_space<vmem>>, vector<3x160xf32>
    tpu.vector_store %arg4[%c12, %c0_16], %13 {strides = array<i32>} : memref<75x160xf32, #tpu.memory_space<vmem>>, vector<3x160xf32>,
    %c0_17 = arith.constant 0 : index
    %c0_18 = arith.constant 0 : index
    %c20 = arith.constant 20 : index
    %15 = vector.load %arg1[%c0_17, %c0_18, %c20] : memref<1x3x260xf32, #tpu.memory_space<vmem>>, vector<1x3x160xf32>
    %16 = vector.shape_cast %15 : vector<1x3x160xf32> to vector<3x160xf32>
    %c15 = arith.constant 15 : index
    %c0_19 = arith.constant 0 : index
    %17 = vector.load %arg4[%c15, %c0_19] : memref<75x160xf32, #tpu.memory_space<vmem>>, vector<3x160xf32>
    tpu.vector_store %arg4[%c15, %c0_19], %16 {strides = array<i32>} : memref<75x160xf32, #tpu.memory_space<vmem>>, vector<3x160xf32>,
    %c0_20 = arith.constant 0 : index
    %c0_21 = arith.constant 0 : index
    %c21 = arith.constant 21 : index
    %18 = vector.load %arg1[%c0_20, %c0_21, %c21] : memref<1x3x260xf32, #tpu.memory_space<vmem>>, vector<1x3x160xf32>
    %19 = vector.shape_cast %18 : vector<1x3x160xf32> to vector<3x160xf32>
    %c18 = arith.constant 18 : index
    %c0_22 = arith.constant 0 : index
    %20 = vector.load %arg4[%c18, %c0_22] : memref<75x160xf32, #tpu.memory_space<vmem>>, vector<3x160xf32>
    tpu.vector_store %arg4[%c18, %c0_22], %19 {strides = array<i32>} : memref<75x160xf32, #tpu.memory_space<vmem>>, vector<3x160xf32>,
    %c0_23 = arith.constant 0 : index
    %c0_24 = arith.constant 0 : index
    %c22 = arith.constant 22 : index
    %21 = vector.load %arg1[%c0_23, %c0_24, %c22] : memref<1x3x260xf32, #tpu.memory_space<vmem>>, vector<1x3x160xf32>
    %22 = vector.shape_cast %21 : vector<1x3x160xf32> to vector<3x160xf32>
    %c21_25 = arith.constant 21 : index
    %c0_26 = arith.constant 0 : index
    %23 = vector.load %arg4[%c21_25, %c0_26] : memref<75x160xf32, #tpu.memory_space<vmem>>, vector<3x160xf32>
    tpu.vector_store %arg4[%c21_25, %c0_26], %22 {strides = array<i32>} : memref<75x160xf32, #tpu.memory_space<vmem>>, vector<3x160xf32>,
    %c0_27 = arith.constant 0 : index
    %c0_28 = arith.constant 0 : index
    %c23 = arith.constant 23 : index
    %24 = vector.load %arg1[%c0_27, %c0_28, %c23] : memref<1x3x260xf32, #tpu.memory_space<vmem>>, vector<1x3x160xf32>
    %25 = vector.shape_cast %24 : vector<1x3x160xf32> to vector<3x160xf32>
    %c24 = arith.constant 24 : index
    %c0_29 = arith.constant 0 : index
    %26 = vector.load %arg4[%c24, %c0_29] : memref<75x160xf32, #tpu.memory_space<vmem>>, vector<3x160xf32>
    tpu.vector_store %arg4[%c24, %c0_29], %25 {strides = array<i32>} : memref<75x160xf32, #tpu.memory_space<vmem>>, vector<3x160xf32>,
    %c0_30 = arith.constant 0 : index
    %c0_31 = arith.constant 0 : index
    %c24_32 = arith.constant 24 : index
    %27 = vector.load %arg1[%c0_30, %c0_31, %c24_32] : memref<1x3x260xf32, #tpu.memory_space<vmem>>, vector<1x3x160xf32>
    %28 = vector.shape_cast %27 : vector<1x3x160xf32> to vector<3x160xf32>
    %c27 = arith.constant 27 : index
    %c0_33 = arith.constant 0 : index
    %29 = vector.load %arg4[%c27, %c0_33] : memref<75x160xf32, #tpu.memory_space<vmem>>, vector<3x160xf32>
    tpu.vector_store %arg4[%c27, %c0_33], %28 {strides = array<i32>} : memref<75x160xf32, #tpu.memory_space<vmem>>, vector<3x160xf32>,
    %c0_34 = arith.constant 0 : index
    %c0_35 = arith.constant 0 : index
    %c40 = arith.constant 40 : index
    %30 = vector.load %arg1[%c0_34, %c0_35, %c40] : memref<1x3x260xf32, #tpu.memory_space<vmem>>, vector<1x3x160xf32>
    %31 = vector.shape_cast %30 : vector<1x3x160xf32> to vector<3x160xf32>
    %c30 = arith.constant 30 : index
    %c0_36 = arith.constant 0 : index
    %32 = vector.load %arg4[%c30, %c0_36] : memref<75x160xf32, #tpu.memory_space<vmem>>, vector<3x160xf32>
    tpu.vector_store %arg4[%c30, %c0_36], %31 {strides = array<i32>} : memref<75x160xf32, #tpu.memory_space<vmem>>, vector<3x160xf32>,
    %c0_37 = arith.constant 0 : index
    %c0_38 = arith.constant 0 : index
    %c41 = arith.constant 41 : index
    %33 = vector.load %arg1[%c0_37, %c0_38, %c41] : memref<1x3x260xf32, #tpu.memory_space<vmem>>, vector<1x3x160xf32>
    %34 = vector.shape_cast %33 : vector<1x3x160xf32> to vector<3x160xf32>
    %c33 = arith.constant 33 : index
    %c0_39 = arith.constant 0 : index
    %35 = vector.load %arg4[%c33, %c0_39] : memref<75x160xf32, #tpu.memory_space<vmem>>, vector<3x160xf32>
    tpu.vector_store %arg4[%c33, %c0_39], %34 {strides = array<i32>} : memref<75x160xf32, #tpu.memory_space<vmem>>, vector<3x160xf32>,
    %c0_40 = arith.constant 0 : index
    %c0_41 = arith.constant 0 : index
    %c42 = arith.constant 42 : index
    %36 = vector.load %arg1[%c0_40, %c0_41, %c42] : memref<1x3x260xf32, #tpu.memory_space<vmem>>, vector<1x3x160xf32>
    %37 = vector.shape_cast %36 : vector<1x3x160xf32> to vector<3x160xf32>
    %c36 = arith.constant 36 : index
    %c0_42 = arith.constant 0 : index
    %38 = vector.load %arg4[%c36, %c0_42] : memref<75x160xf32, #tpu.memory_space<vmem>>, vector<3x160xf32>
    tpu.vector_store %arg4[%c36, %c0_42], %37 {strides = array<i32>} : memref<75x160xf32, #tpu.memory_space<vmem>>, vector<3x160xf32>,
    %c0_43 = arith.constant 0 : index
    %c0_44 = arith.constant 0 : index
    %c43 = arith.constant 43 : index
    %39 = vector.load %arg1[%c0_43, %c0_44, %c43] : memref<1x3x260xf32, #tpu.memory_space<vmem>>, vector<1x3x160xf32>
    %40 = vector.shape_cast %39 : vector<1x3x160xf32> to vector<3x160xf32>
    %c39 = arith.constant 39 : index
    %c0_45 = arith.constant 0 : index
    %41 = vector.load %arg4[%c39, %c0_45] : memref<75x160xf32, #tpu.memory_space<vmem>>, vector<3x160xf32>
    tpu.vector_store %arg4[%c39, %c0_45], %40 {strides = array<i32>} : memref<75x160xf32, #tpu.memory_space<vmem>>, vector<3x160xf32>,
    %c0_46 = arith.constant 0 : index
    %c0_47 = arith.constant 0 : index
    %c44 = arith.constant 44 : index
    %42 = vector.load %arg1[%c0_46, %c0_47, %c44] : memref<1x3x260xf32, #tpu.memory_space<vmem>>, vector<1x3x160xf32>
    %43 = vector.shape_cast %42 : vector<1x3x160xf32> to vector<3x160xf32>
    %c42_48 = arith.constant 42 : index
    %c0_49 = arith.constant 0 : index
    %44 = vector.load %arg4[%c42_48, %c0_49] : memref<75x160xf32, #tpu.memory_space<vmem>>, vector<3x160xf32>
    tpu.vector_store %arg4[%c42_48, %c0_49], %43 {strides = array<i32>} : memref<75x160xf32, #tpu.memory_space<vmem>>, vector<3x160xf32>,
    %c0_50 = arith.constant 0 : index
    %c0_51 = arith.constant 0 : index
    %c60 = arith.constant 60 : index
    %45 = vector.load %arg1[%c0_50, %c0_51, %c60] : memref<1x3x260xf32, #tpu.memory_space<vmem>>, vector<1x3x160xf32>
    %46 = vector.shape_cast %45 : vector<1x3x160xf32> to vector<3x160xf32>
    %c45 = arith.constant 45 : index
    %c0_52 = arith.constant 0 : index
    %47 = vector.load %arg4[%c45, %c0_52] : memref<75x160xf32, #tpu.memory_space<vmem>>, vector<3x160xf32>
    tpu.vector_store %arg4[%c45, %c0_52], %46 {strides = array<i32>} : memref<75x160xf32, #tpu.memory_space<vmem>>, vector<3x160xf32>,
    %c0_53 = arith.constant 0 : index
    %c0_54 = arith.constant 0 : index
    %c61 = arith.constant 61 : index
    %48 = vector.load %arg1[%c0_53, %c0_54, %c61] : memref<1x3x260xf32, #tpu.memory_space<vmem>>, vector<1x3x160xf32>
    %49 = vector.shape_cast %48 : vector<1x3x160xf32> to vector<3x160xf32>
    %c48 = arith.constant 48 : index
    %c0_55 = arith.constant 0 : index
    %50 = vector.load %arg4[%c48, %c0_55] : memref<75x160xf32, #tpu.memory_space<vmem>>, vector<3x160xf32>
    tpu.vector_store %arg4[%c48, %c0_55], %49 {strides = array<i32>} : memref<75x160xf32, #tpu.memory_space<vmem>>, vector<3x160xf32>,
    %c0_56 = arith.constant 0 : index
    %c0_57 = arith.constant 0 : index
    %c62 = arith.constant 62 : index
    %51 = vector.load %arg1[%c0_56, %c0_57, %c62] : memref<1x3x260xf32, #tpu.memory_space<vmem>>, vector<1x3x160xf32>
    %52 = vector.shape_cast %51 : vector<1x3x160xf32> to vector<3x160xf32>
    %c51 = arith.constant 51 : index
    %c0_58 = arith.constant 0 : index
    %53 = vector.load %arg4[%c51, %c0_58] : memref<75x160xf32, #tpu.memory_space<vmem>>, vector<3x160xf32>
    tpu.vector_store %arg4[%c51, %c0_58], %52 {strides = array<i32>} : memref<75x160xf32, #tpu.memory_space<vmem>>, vector<3x160xf32>,
    %c0_59 = arith.constant 0 : index
    %c0_60 = arith.constant 0 : index
    %c63 = arith.constant 63 : index
    %54 = vector.load %arg1[%c0_59, %c0_60, %c63] : memref<1x3x260xf32, #tpu.memory_space<vmem>>, vector<1x3x160xf32>
    %55 = vector.shape_cast %54 : vector<1x3x160xf32> to vector<3x160xf32>
    %c54 = arith.constant 54 : index
    %c0_61 = arith.constant 0 : index
    %56 = vector.load %arg4[%c54, %c0_61] : memref<75x160xf32, #tpu.memory_space<vmem>>, vector<3x160xf32>
    tpu.vector_store %arg4[%c54, %c0_61], %55 {strides = array<i32>} : memref<75x160xf32, #tpu.memory_space<vmem>>, vector<3x160xf32>,
    %c0_62 = arith.constant 0 : index
    %c0_63 = arith.constant 0 : index
    %c64 = arith.constant 64 : index
    %57 = vector.load %arg1[%c0_62, %c0_63, %c64] : memref<1x3x260xf32, #tpu.memory_space<vmem>>, vector<1x3x160xf32>
    %58 = vector.shape_cast %57 : vector<1x3x160xf32> to vector<3x160xf32>
    %c57 = arith.constant 57 : index
    %c0_64 = arith.constant 0 : index
    %59 = vector.load %arg4[%c57, %c0_64] : memref<75x160xf32, #tpu.memory_space<vmem>>, vector<3x160xf32>
    tpu.vector_store %arg4[%c57, %c0_64], %58 {strides = array<i32>} : memref<75x160xf32, #tpu.memory_space<vmem>>, vector<3x160xf32>,
    %c0_65 = arith.constant 0 : index
    %c0_66 = arith.constant 0 : index
    %c80 = arith.constant 80 : index
    %60 = vector.load %arg1[%c0_65, %c0_66, %c80] : memref<1x3x260xf32, #tpu.memory_space<vmem>>, vector<1x3x160xf32>
    %61 = vector.shape_cast %60 : vector<1x3x160xf32> to vector<3x160xf32>
    %c60_67 = arith.constant 60 : index
    %c0_68 = arith.constant 0 : index
    %62 = vector.load %arg4[%c60_67, %c0_68] : memref<75x160xf32, #tpu.memory_space<vmem>>, vector<3x160xf32>
    tpu.vector_store %arg4[%c60_67, %c0_68], %61 {strides = array<i32>} : memref<75x160xf32, #tpu.memory_space<vmem>>, vector<3x160xf32>,
    %c0_69 = arith.constant 0 : index
    %c0_70 = arith.constant 0 : index
    %c81 = arith.constant 81 : index
    %63 = vector.load %arg1[%c0_69, %c0_70, %c81] : memref<1x3x260xf32, #tpu.memory_space<vmem>>, vector<1x3x160xf32>
    %64 = vector.shape_cast %63 : vector<1x3x160xf32> to vector<3x160xf32>
    %c63_71 = arith.constant 63 : index
    %c0_72 = arith.constant 0 : index
    %65 = vector.load %arg4[%c63_71, %c0_72] : memref<75x160xf32, #tpu.memory_space<vmem>>, vector<3x160xf32>
    tpu.vector_store %arg4[%c63_71, %c0_72], %64 {strides = array<i32>} : memref<75x160xf32, #tpu.memory_space<vmem>>, vector<3x160xf32>,
    %c0_73 = arith.constant 0 : index
    %c0_74 = arith.constant 0 : index
    %c82 = arith.constant 82 : index
    %66 = vector.load %arg1[%c0_73, %c0_74, %c82] : memref<1x3x260xf32, #tpu.memory_space<vmem>>, vector<1x3x160xf32>
    %67 = vector.shape_cast %66 : vector<1x3x160xf32> to vector<3x160xf32>
    %c66 = arith.constant 66 : index
    %c0_75 = arith.constant 0 : index
    %68 = vector.load %arg4[%c66, %c0_75] : memref<75x160xf32, #tpu.memory_space<vmem>>, vector<3x160xf32>
    tpu.vector_store %arg4[%c66, %c0_75], %67 {strides = array<i32>} : memref<75x160xf32, #tpu.memory_space<vmem>>, vector<3x160xf32>,
    %c0_76 = arith.constant 0 : index
    %c0_77 = arith.constant 0 : index
    %c83 = arith.constant 83 : index
    %69 = vector.load %arg1[%c0_76, %c0_77, %c83] : memref<1x3x260xf32, #tpu.memory_space<vmem>>, vector<1x3x160xf32>
    %70 = vector.shape_cast %69 : vector<1x3x160xf32> to vector<3x160xf32>
    %c69 = arith.constant 69 : index
    %c0_78 = arith.constant 0 : index
    %71 = vector.load %arg4[%c69, %c0_78] : memref<75x160xf32, #tpu.memory_space<vmem>>, vector<3x160xf32>
    tpu.vector_store %arg4[%c69, %c0_78], %70 {strides = array<i32>} : memref<75x160xf32, #tpu.memory_space<vmem>>, vector<3x160xf32>,
    %c0_79 = arith.constant 0 : index
    %c0_80 = arith.constant 0 : index
    %c84 = arith.constant 84 : index
    %72 = vector.load %arg1[%c0_79, %c0_80, %c84] : memref<1x3x260xf32, #tpu.memory_space<vmem>>, vector<1x3x160xf32>
    %73 = vector.shape_cast %72 : vector<1x3x160xf32> to vector<3x160xf32>
    %c72 = arith.constant 72 : index
    %c0_81 = arith.constant 0 : index
    %74 = vector.load %arg4[%c72, %c0_81] : memref<75x160xf32, #tpu.memory_space<vmem>>, vector<3x160xf32>
    tpu.vector_store %arg4[%c72, %c0_81], %73 {strides = array<i32>} : memref<75x160xf32, #tpu.memory_space<vmem>>, vector<3x160xf32>,
    %c0_82 = arith.constant 0 : index
    %c0_83 = arith.constant 0 : index
    %75 = vector.load %arg2[%c0_82, %c0_83] : memref<30x75xf32, #tpu.memory_space<vmem>>, vector<30x75xf32>
    %c0_84 = arith.constant 0 : index
    %c0_85 = arith.constant 0 : index
    %76 = vector.load %arg4[%c0_84, %c0_85] : memref<75x160xf32, #tpu.memory_space<vmem>>, vector<75x160xf32>
    %cst = arith.constant dense<0.000000e+00> : vector<30x160xf32>
    %77 = tpu.matmul %75, %76, %cst {dimension_numbers = #tpu.dot_dimension_numbers<[1], [0], [0], [1], [0, 0, 1, 1], [], []>} : vector<30x75xf32>, vector<75x160xf32>, vector<30x160xf32> -> vector<30x160xf32>
    %c0_86 = arith.constant 0 : index
    %c0_87 = arith.constant 0 : index
    %c0_88 = arith.constant 0 : index
    %78 = vector.load %arg3[%c0_86, %c0_87, %c0_88] : memref<1x30x160xf32, #tpu.memory_space<vmem>>, vector<1x30x160xf32>
    %79 = vector.shape_cast %78 : vector<1x30x160xf32> to vector<30x160xf32>
    %80 = vector.shape_cast %77 : vector<30x160xf32> to vector<1x30x160xf32>
    tpu.vector_store %arg3[%c0_86, %c0_87, %c0_88], %80 {strides = array<i32>} : memref<1x30x160xf32, #tpu.memory_space<vmem>>, vector<1x30x160xf32>,
    return
  }
  func.func @transform_0(%arg0: i32) -> (i32, i32, i32) {
    %c0_i32 = arith.constant 0 : i32
    %c0_i32_0 = arith.constant 0 : i32
    %c0_i32_1 = arith.constant 0 : i32
    return %arg0, %c0_i32, %c0_i32_0 : i32, i32, i32
  }
  func.func @transform_1(%arg0: i32) -> (i32, i32) {
    %c0_i32 = arith.constant 0 : i32
    %c0_i32_0 = arith.constant 0 : i32
    %c0_i32_1 = arith.constant 0 : i32
    return %c0_i32, %c0_i32_0 : i32, i32
  }
  func.func @transform_2(%arg0: i32) -> (i32, i32, i32) {
    %c0_i32 = arith.constant 0 : i32
    %c0_i32_0 = arith.constant 0 : i32
    %c0_i32_1 = arith.constant 0 : i32
    return %arg0, %c0_i32, %c0_i32_0 : i32, i32, i32
  }
}

</mosaic_0001>

<bundles_post_ra>
// kernel: srm_conv2d.1
= control target key start
LH: loop header
LB: loop body
LE: loop exit
PB: predicated region body
PF: predicated region fallthrough
CT: control target
= control target key end

     0   :  { %s862_s9 = smov 0   ;;  %s984_s0 = inlined_call_operand.vmem [shape: f32[4,3,260], index: 0, kind: input, shape index: {}]   ;;  %s985_s1 = inlined_call_operand.vmem [shape: f32[30,75], index: 1, kind: input, shape index: {}]   ;;  %s986_s2 = inlined_call_operand.vmem [shape: f32[4,30,160], index: 2, kind: output, shape index: {}]  }
   0x1 LB: > { %s741_s10 = sadd.s32 4294967295, %s821_s9   ;;  %p745_p0 = scmp.ge.s32.totalorder %s821_s9, 1  ;;  %s821_s9 = sphi %s862_s9, %s12_s9  }
   0x2   : > { %p112_p1 = scmp.lt.s32.totalorder %s821_s9, 5 }
   0x4   : > { %p113_p2 = pnand %p745_p0, %p112_p1 }
   0x5   : > { %p134_p3 = scmp.lt.s32.totalorder (!%p113_p2), %s741_s10, 3  ;;  %s823_s15 = smov (!%p113_p2), 126  }
   0x6   : > { %116 = sbr.rel (%p113_p2) target bundleno = 511 (0x1ff), region = 28  ;;  %s824_s16 = smov (!%p113_p2), 108  }
   0x7   : > { %s825_s17 = smov (!%p113_p2), 107   ;;  %s826_s18 = smov (!%p113_p2), 106  }
   0x8   : > { %s827_s19 = smov (!%p113_p2), 105   ;;  %s828_s20 = smov (!%p113_p2), 104  }
   0x9   : > { %s829_s21 = smov (!%p113_p2), 88   ;;  %s830_s22 = smov (!%p113_p2), 87  }
   0xa   : > { %s831_s23 = smov (!%p113_p2), 86   ;;  %s832_s24 = smov (!%p113_p2), 85  }
   0xb   : > { %s988_s10 = smov (!%p134_p3, %s741_s10), 3  ;;  %s833_s25 = smov 84   ;;  %vm188_vm0 = vcmask 261126   ;;  %vm191_vm1 = vcmask 253952   ;;  %vm244_vm2 = vcmask 261127   ;;  %vm247_vm3 = vcmask 254976  }
   0xc   : > { %s782_s11 = smul.u32 12, %s988_s10  ;;  %s834_s26 = smov 68   ;;  %vm183_vm4 = vcmask 1031168   ;;  %vm278_vm5 = vcmask 867328   ;;  %vm283_vm6 = vcmask 261125   ;;  %vm239_vm7 = vcmask 883712  }
   0xd   : > { %s835_s27 = smov 67   ;;  %s836_s28 = smov 66   ;;  %vm260_vm8 = vcmask 875520   ;;  %vm265_vm9 = vcmask 258050   ;;  %vm226_vm10 = vcmask 260100   ;;  %vm311_vm11 = vcmask 850944  }
   0xe   : > { %s876_s14 = scalar_lea.vmem %s984_s0, %s782_s11  ;;  %s837_s29 = smov 65   ;;  %vm152_vm12 = vcmask 256000   ;;  %vm294_vm13 = vcmask 859136   ;;  %vm170_vm14 = vcmask 259075   ;;  %vm328_vm15 = vcmask 719872  }
   0xf   : > { %v144_v0 = vld [vmem:[%s876_s14] sm:$0x77]  ;;  %s838_s30 = smov 64   ;;  %s839_s3 = smov 48  }
  0x10   : > { %146 = vst [vmem:[#allocation1] ss:$2 sm:$0xff] %v144_v0  ;;  %v154_v1 = vld [vmem:[%s876_s14] sm:$0x77]  ;;  %s840_s4 = smov 47   ;;  %s841_s5 = smov 46  }
  0x11   : > { %v172_v4 = vld [vmem:[%s876_s14] sm:$0x77]  ;;  %s842_s6 = smov 45   ;;  %s843_s7 = smov 124  }
  0x12   : > { %v193_v7 = vld [vmem:[%s876_s14] sm:$0x77]  ;;  %s844_s8 = smov 44   ;;  %s845_s11 = smov 125  }
  0x13   : > { %v211_v12 = vld [vmem:[%s876_s14] sm:$0x77]  ;;  %s846_s12 = smov 127  }
  0x14   : > { %v228_v15 = vld [vmem:[%s876_s14] sm:$0x77] }
  0x15   : > { %v249_v18 = vld [vmem:[%s876_s14] sm:$0x77] }
  0x16   : > { %v267_v23 = vld [vmem:[%s876_s14] sm:$0x77] }
  0x17   : > { %v147_v2 = vld.sshfl [vmem:[#allocation1] sm:$0xff pattern:$0x75316420]  ;;  %v880_v3 = vld.sshfl [vmem:[#allocation1 + $0x8] sm:$0xff pattern:$0x75316420] }
  0x18   : > { %156 = vst [vmem:[#allocation1] ss:$2 sm:$0xff] %v154_v1  ;;  %v285_v28 = vld [vmem:[%s876_s14] sm:$0x77] }
  0x19   : > { %151 = vst [vmem:[#allocation2] sm:$0x7] %v147_v2  ;;  %v300_v33 = vld [vmem:[%s876_s14] sm:$0x77] }
  0x1a   : > { %v317_v36 = vld [vmem:[%s876_s14] sm:$0x77]  ;;  %153 = vst.msk [vmem:[#allocation2 + $0x8] sm:$0x7] %vm152_vm12, %v880_v3 }
  0x1b   : > { %v336_v41 = vld [vmem:[%s876_s14] sm:$0x77] }
  0x1c   : > { %v353_v46 = vld [vmem:[%s876_s14] sm:$0x77] }
  0x1d   : > { %v369_v51 = vld [vmem:[%s876_s14] sm:$0x77] }
  0x1e   : > { %v388_v54 = vld [vmem:[%s876_s14] sm:$0x77] }
  0x1f   : > { %v883_v5 = vld.sshfl [vmem:[#allocation1] sm:$0xff pattern:$0x75316420]  ;;  %v885_v6 = vld.sshfl [vmem:[#allocation1 + $0x8] sm:$0xff pattern:$0x75316420] }
  0x20   : > { %174 = vst [vmem:[#allocation1] ss:$2 sm:$0xff] %v172_v4  ;;  %v405_v59 = vld [vmem:[%s876_s14] sm:$0x77] }
  0x21   : > { %v422_v0 = vld [vmem:[%s876_s14] sm:$0x77] }
  0x27   : > { %v176_v8 = vld.sshfl [vmem:[#allocation1 + $0x8] sm:$0xff pattern:$0x75316420]  ;;  %v175_v9 = vld.sshfl [vmem:[#allocation1] sm:$0xff pattern:$0x75316420] }
  0x28   : > { %v178_v10 = vrot.slane %v176_v8, 2  ;;  %195 = vst [vmem:[#allocation1] ss:$2 sm:$0xff] %v193_v7  ;;  %v177_v11 = vrot.slane %v175_v9, 2  ;;  %v437_v8 = vld [vmem:[%s876_s14] sm:$0x77] }
  0x2a   : > { %181 = vrot.lane.b32.xlu2 %v178_v10, %s823_s15  ;;  %179 = vrot.lane.b32.xlu1 %v177_v11, %s823_s15  ;;  %v454_v11 = vld [vmem:[%s876_s14] sm:$0x77] }
  0x2f   : > { %v889_v13 = vld.sshfl [vmem:[#allocation1] sm:$0xff pattern:$0x75316420]  ;;  %v891_v14 = vld.sshfl [vmem:[#allocation1 + $0x8] sm:$0xff pattern:$0x75316420] }
  0x30   : > { %214 = vst [vmem:[#allocation1 + $0x1] ss:$2 sm:$0xff] %v211_v12 }
  0x37   : > { %v894_v16 = vld.sshfl [vmem:[#allocation1] sm:$0xff pattern:$0x75316420]  ;;  %v896_v17 = vld.sshfl [vmem:[#allocation1 + $0x8] sm:$0xff pattern:$0x75316420] }
  0x38   : > { %230 = vst [vmem:[#allocation1] ss:$2 sm:$0xff] %v228_v15 }
  0x3f   : > { %v231_v19 = vld.sshfl [vmem:[#allocation1] sm:$0xff pattern:$0x75316420]  ;;  %v232_v20 = vld.sshfl [vmem:[#allocation1 + $0x8] sm:$0xff pattern:$0x75316420] }
  0x40   : > { %251 = vst [vmem:[#allocation1] ss:$2 sm:$0xff] %v249_v18  ;;  %v234_v21 = vrot.slane %v232_v20, 1  ;;  %v233_v22 = vrot.slane %v231_v19, 1 }
  0x42   : > { %237 = vrot.lane.b32.xlu2 %v234_v21, %s824_s16  ;;  %235 = vrot.lane.b32.xlu1 %v233_v22, %s824_s16  ;;  %v473_v21 = vld [vmem:[%s876_s14] sm:$0x77] }
  0x47   : > { %v252_v24 = vld.sshfl [vmem:[#allocation1] sm:$0xff pattern:$0x75316420]  ;;  %v253_v25 = vld.sshfl [vmem:[#allocation1 + $0x8] sm:$0xff pattern:$0x75316420] }
  0x48   : > { %v254_v26 = vrot.slane %v252_v24, 6  ;;  %269 = vst [vmem:[#allocation1] ss:$2 sm:$0xff] %v267_v23  ;;  %v255_v27 = vrot.slane %v253_v25, 6 }
  0x4a   : > { %256 = vrot.lane.b32.xlu0 %v254_v26, %s825_s17  ;;  %258 = vrot.lane.b32.xlu1 %v255_v27, %s825_s17  ;;  %v490_v27 = vld [vmem:[%s876_s14] sm:$0x77] }
  0x4f   : > { %v271_v29 = vld.sshfl [vmem:[#allocation1 + $0x8] sm:$0xff pattern:$0x75316420]  ;;  %v270_v30 = vld.sshfl [vmem:[#allocation1] sm:$0xff pattern:$0x75316420] }
  0x50   : > { %v273_v31 = vrot.slane %v271_v29, 3  ;;  %v272_v32 = vrot.slane %v270_v30, 3  ;;  %287 = vst [vmem:[#allocation1] ss:$2 sm:$0xff] %v285_v28 }
  0x52   : > { %276 = vrot.lane.b32.xlu0 %v273_v31, %s826_s18  ;;  %274 = vrot.lane.b32.xlu2 %v272_v32, %s826_s18  ;;  %v506_v32 = vld [vmem:[%s876_s14] sm:$0x77] }
  0x57   : > { %v288_v34 = vld.sshfl [vmem:[#allocation1] sm:$0xff pattern:$0x75316420]  ;;  %v289_v35 = vld.sshfl [vmem:[#allocation1 + $0x8] sm:$0xff pattern:$0x75316420] }
  0x58   : > { %302 = vst [vmem:[#allocation1] ss:$2 sm:$0xff] %v300_v33  ;;  %292 = vrot.lane.b32.xlu1 %v289_v35, %s827_s19 }
  0x5a   : > { %290 = vrot.lane.b32.xlu0 %v288_v34, %s827_s19 }
  0x5f   : > { %v303_v37 = vld.sshfl [vmem:[#allocation1] sm:$0xff pattern:$0x75316420]  ;;  %v304_v38 = vld.sshfl [vmem:[#allocation1 + $0x8] sm:$0xff pattern:$0x75316420] }
  0x60   : > { %v305_v39 = vrot.slane %v303_v37, 5  ;;  %v306_v40 = vrot.slane %v304_v38, 5  ;;  %319 = vst [vmem:[#allocation1] ss:$2 sm:$0xff] %v317_v36 }
  0x62   : > { %307 = vrot.lane.b32.xlu2 %v305_v39, %s828_s20  ;;  %309 = vrot.lane.b32.xlu0 %v306_v40, %s828_s20  ;;  %v525_v39 = vld [vmem:[%s876_s14] sm:$0x77] }
  0x67   : > { %v320_v42 = vld.sshfl [vmem:[#allocation1] sm:$0xff pattern:$0x75316420]  ;;  %v321_v43 = vld.sshfl [vmem:[#allocation1 + $0x8] sm:$0xff pattern:$0x75316420] }
  0x68   : > { %338 = vst [vmem:[#allocation1] ss:$2 sm:$0xff] %v336_v41  ;;  %v322_v44 = vrot.slane %v320_v42, 2  ;;  %v323_v45 = vrot.slane %v321_v43, 2 }
  0x6a   : > { %324 = vrot.lane.b32.xlu0 %v322_v44, %s829_s21  ;;  %326 = vrot.lane.b32.xlu1 %v323_v45, %s829_s21  ;;  %s761_s21 = sshll.u32 %s988_s10, 6 }
  0x6f   : > { %v339_v47 = vld.sshfl [vmem:[#allocation1] sm:$0xff pattern:$0x75316420]  ;;  %v340_v48 = vld.sshfl [vmem:[#allocation1 + $0x8] sm:$0xff pattern:$0x75316420] }
  0x70   : > { %v341_v49 = vrot.slane %v339_v47, 7  ;;  %356 = vst [vmem:[#allocation1 + $0x1] ss:$2 sm:$0xff] %v353_v46  ;;  %v342_v50 = vrot.slane %v340_v48, 7  ;;  %v542_v46 = vld [vmem:[%s876_s14] sm:$0x77] }
  0x72   : > { %343 = vrot.lane.b32.xlu2 %v341_v49, %s830_s22  ;;  %345 = vrot.lane.b32.xlu0 %v342_v50, %s830_s22 }
  0x77   : > { %v358_v52 = vld.sshfl [vmem:[#allocation1 + $0x8] sm:$0xff pattern:$0x75316420]  ;;  %v357_v53 = vld.sshfl [vmem:[#allocation1] sm:$0xff pattern:$0x75316420] }
  0x78   : > { %371 = vst [vmem:[#allocation1] ss:$2 sm:$0xff] %v369_v51  ;;  %359 = vrot.lane.b32.xlu1 %v357_v53, %s831_s23 }
  0x7a   : > { %361 = vrot.lane.b32.xlu2 %v358_v52, %s831_s23 }
  0x7f   : > { %v372_v55 = vld.sshfl [vmem:[#allocation1] sm:$0xff pattern:$0x75316420]  ;;  %v373_v56 = vld.sshfl [vmem:[#allocation1 + $0x8] sm:$0xff pattern:$0x75316420] }
  0x80   : > { %390 = vst [vmem:[#allocation1] ss:$2 sm:$0xff] %v388_v54  ;;  %v374_v57 = vrot.slane %v372_v55, 1  ;;  %v375_v58 = vrot.slane %v373_v56, 1 }
  0x82   : > { %376 = vrot.lane.b32.xlu0 %v374_v57, %s832_s24  ;;  %378 = vrot.lane.b32.xlu1 %v375_v58, %s832_s24  ;;  %v559_v57 = vld [vmem:[%s876_s14] sm:$0x77]  ;;  %s143_s24 = scalar_lea.vmem %s986_s2, %s761_s21 }
  0x84   : > { %v182_v20 = vpop.permute.xlu2 %181 }
  0x85   : > { %189 = vst.msk [vmem:[#allocation2 + $0x8] sm:$0xc0] %vm188_vm0, %v182_v20 }
  0x86   : > { %192 = vst.msk [vmem:[#allocation2 + $0x18] sm:$0x1] %vm191_vm1, %v182_v20 }
  0x87   : > { %v391_v60 = vld.sshfl [vmem:[#allocation1] sm:$0xff pattern:$0x75316420]  ;;  %v392_v61 = vld.sshfl [vmem:[#allocation1 + $0x8] sm:$0xff pattern:$0x75316420] }
  0x88   : > { %v393_v62 = vrot.slane %v391_v60, 6  ;;  %407 = vst [vmem:[#allocation1] ss:$2 sm:$0xff] %v405_v59  ;;  %v394_v63 = vrot.slane %v392_v61, 6 }
  0x8a   : > { %395 = vrot.lane.b32.xlu2 %v393_v62, %s833_s25  ;;  %397 = vrot.lane.b32.xlu0 %v394_v63, %s833_s25 }
  0x8f   : > { %v409_v1 = vld.sshfl [vmem:[#allocation1 + $0x8] sm:$0xff pattern:$0x75316420]  ;;  %v408_v2 = vld.sshfl [vmem:[#allocation1] sm:$0xff pattern:$0x75316420] }
  0x90   : > { %v411_v4 = vrot.slane %v409_v1, 3  ;;  %v410_v7 = vrot.slane %v408_v2, 3  ;;  %424 = vst [vmem:[#allocation1] ss:$2 sm:$0xff] %v422_v0 }
  0x92   : > { %414 = vrot.lane.b32.xlu2 %v411_v4, %s834_s26  ;;  %412 = vrot.lane.b32.xlu1 %v410_v7, %s834_s26 }
  0x97   : > { %v425_v9 = vld.sshfl [vmem:[#allocation1] sm:$0xff pattern:$0x75316420]  ;;  %v426_v10 = vld.sshfl [vmem:[#allocation1 + $0x8] sm:$0xff pattern:$0x75316420] }
  0x98   : > { %439 = vst [vmem:[#allocation1] ss:$2 sm:$0xff] %v437_v8  ;;  %429 = vrot.lane.b32.xlu0 %v426_v10, %s835_s27  ;;  %v199_v8 = vrot.slane %v891_v14, 7 }
  0x9a   : > { %427 = vrot.lane.b32.xlu2 %v425_v9, %s835_s27 }
  0x9c   : > { %v238_v26 = vpop.permute.xlu2 %237  ;;  %v180_v36 = vpop.permute.xlu1 %179 }
  0x9d   : > { %245 = vst.msk [vmem:[#allocation2 + $0x18] sm:$0x80] %vm244_vm2, %v238_v26  ;;  %v184_v38 = vsel %vm183_vm4, %v180_v36, %v182_v20  ;;  %vm209_vm4 = vcmask 257025  }
  0x9e   : > { %248 = vst.msk [vmem:[#allocation2 + $0x28] sm:$0x3] %vm247_vm3, %v238_v26 }
  0x9f   : > { %v440_v12 = vld.sshfl [vmem:[#allocation1] sm:$0xff pattern:$0x75316420]  ;;  %v441_v15 = vld.sshfl [vmem:[#allocation1 + $0x8] sm:$0xff pattern:$0x75316420] }
  0xa0   : > { %v442_v18 = vrot.slane %v440_v12, 5  ;;  %v443_v19 = vrot.slane %v441_v15, 5  ;;  %456 = vst [vmem:[#allocation1] ss:$2 sm:$0xff] %v454_v11  ;;  %v160_v11 = vrot.slane %v885_v6, 5  ;;  %v159_v12 = vrot.slane %v883_v5, 5 }
  0xa1   : > { %187 = vst [vmem:[#allocation2] sm:$0xc0] %v184_v38  ;;  %v198_v6 = vrot.slane %v889_v13, 7 }
  0xa2   : > { %444 = vrot.lane.b32.xlu1 %v442_v18, %s836_s28  ;;  %446 = vrot.lane.b32.xlu2 %v443_v19, %s836_s28  ;;  %190 = vst [vmem:[#allocation2 + $0x10] sm:$0x1] %v184_v38 }
  0xa7   : > { %v457_v22 = vld.sshfl [vmem:[#allocation1] sm:$0xff pattern:$0x75316420]  ;;  %v458_v23 = vld.sshfl [vmem:[#allocation1 + $0x8] sm:$0xff pattern:$0x75316420] }
  0xa8   : > { %475 = vst [vmem:[#allocation1] ss:$2 sm:$0xff] %v473_v21  ;;  %v459_v24 = vrot.slane %v457_v22, 2  ;;  %v460_v25 = vrot.slane %v458_v23, 2 }
  0xaa   : > { %461 = vrot.lane.b32.xlu2 %v459_v24, %s837_s29  ;;  %463 = vrot.lane.b32.xlu0 %v460_v25, %s837_s29 }
  0xac   : > { %v275_v35 = vpop.permute.xlu2 %274 }
  0xaf   : > { %v476_v28 = vld.sshfl [vmem:[#allocation1] sm:$0xff pattern:$0x75316420]  ;;  %v477_v29 = vld.sshfl [vmem:[#allocation1 + $0x8] sm:$0xff pattern:$0x75316420] }
  0xb0   : > { %v478_v30 = vrot.slane %v476_v28, 7  ;;  %493 = vst [vmem:[#allocation1 + $0x1] ss:$2 sm:$0xff] %v490_v27  ;;  %v479_v31 = vrot.slane %v477_v29, 7 }
  0xb2   : > { %480 = vrot.lane.b32.xlu1 %v478_v30, %s838_s30  ;;  %482 = vrot.lane.b32.xlu2 %v479_v31, %s838_s30 }
  0xb4   : > { %v236_v44 = vpop.permute.xlu1 %235 }
  0xb5   : > { %v240_v51 = vsel %vm239_vm7, %v236_v44, %v238_v26  ;;  %vm363_vm7 = vcmask 703488  }
  0xb6   : > { %243 = vst [vmem:[#allocation2 + $0x10] sm:$0x80] %v240_v51 }
  0xb7   : > { %v494_v33 = vld.sshfl [vmem:[#allocation1] sm:$0xff pattern:$0x75316420]  ;;  %v495_v34 = vld.sshfl [vmem:[#allocation1 + $0x8] sm:$0xff pattern:$0x75316420] }
  0xb8   : > { %508 = vst [vmem:[#allocation1] ss:$2 sm:$0xff] %v506_v32  ;;  %496 = vrot.lane.b32.xlu0 %v494_v33, %s839_s3 }
  0xb9   : > { %246 = vst [vmem:[#allocation2 + $0x20] sm:$0x3] %v240_v51 }
  0xba   : > { %498 = vrot.lane.b32.xlu1 %v495_v34, %s839_s3 }
  0xbc   : > { %v257_v37 = vpop.permute.xlu0 %256  ;;  %v308_v43 = vpop.permute.xlu2 %307 }
  0xbd   : > { %v259_v53 = vpop.permute.xlu1 %258 }
  0xbe   : > { %v261_v56 = vsel %vm260_vm8, %v257_v37, %v259_v53  ;;  %266 = vst.msk [vmem:[#allocation2 + $0x28] sm:$0x1c] %vm265_vm9, %v259_v53  ;;  %vm380_vm8 = vcmask 695296  }
  0xbf   : > { %v509_v40 = vld.sshfl [vmem:[#allocation1] sm:$0xff pattern:$0x75316420]  ;;  %v510_v41 = vld.sshfl [vmem:[#allocation1 + $0x8] sm:$0xff pattern:$0x75316420] }
  0xc0   : > { %v511_v42 = vrot.slane %v509_v40, 1  ;;  %527 = vst [vmem:[#allocation1] ss:$2 sm:$0xff] %v525_v39  ;;  %v512_v48 = vrot.slane %v510_v41, 1 }
  0xc1   : > { %264 = vst [vmem:[#allocation2 + $0x20] sm:$0x1c] %v261_v56 }
  0xc2   : > { %513 = vrot.lane.b32.xlu1 %v511_v42, %s840_s4 }
  0xc4   : > { %v277_v45 = vpop.permute.xlu0 %276 }
  0xc5   : > { %v279_v47 = vsel %vm278_vm5, %v275_v35, %v277_v45  ;;  %284 = vst.msk [vmem:[#allocation2 + $0x28] sm:$0xe0] %vm283_vm6, %v277_v45  ;;  %vm347_vm5 = vcmask 711680  }
  0xc6   : > { %282 = vst [vmem:[#allocation2 + $0x20] sm:$0xe0] %v279_v47 }
  0xc7   : > { %v528_v49 = vld.sshfl [vmem:[#allocation1] sm:$0xff pattern:$0x75316420]  ;;  %v529_v50 = vld.sshfl [vmem:[#allocation1 + $0x8] sm:$0xff pattern:$0x75316420] }
  0xc8   : > { %v530_v52 = vrot.slane %v528_v49, 6  ;;  %544 = vst [vmem:[#allocation1] ss:$2 sm:$0xff] %v542_v46  ;;  %v531_v58 = vrot.slane %v529_v50, 6 }
  0xca   : > { %532 = vrot.lane.b32.xlu2 %v530_v52, %s841_s5  ;;  %515 = vrot.lane.b32.xlu1 %v512_v48, %s840_s4  ;;  %v293_v63 = vpop.permute.xlu1 %292 }
  0xcb   : > { %299 = vst.msk [vmem:[#allocation2 + $0x38] sm:$0x7] %vm152_vm12, %v293_v63 }
  0xcc   : > { %v344_v54 = vpop.permute.xlu2 %343  ;;  %v291_v55 = vpop.permute.xlu0 %290 }
  0xcd   : > { %v295_v4 = vsel %vm294_vm13, %v291_v55, %v293_v63  ;;  %vm416_vm13 = vcmask 556032  }
  0xce   : > { %298 = vst [vmem:[#allocation2 + $0x30] sm:$0x7] %v295_v4 }
  0xcf   : > { %v545_v59 = vld.sshfl [vmem:[#allocation1] sm:$0xff pattern:$0x75316420]  ;;  %v546_v60 = vld.sshfl [vmem:[#allocation1 + $0x8] sm:$0xff pattern:$0x75316420] }
  0xd0   : > { %v547_v61 = vrot.slane %v545_v59, 3  ;;  %v548_v62 = vrot.slane %v546_v60, 3  ;;  %561 = vst [vmem:[#allocation1] ss:$2 sm:$0xff] %v559_v57 }
  0xd2   : > { %534 = vrot.lane.b32.xlu2 %v531_v58, %s841_s5  ;;  %549 = vrot.lane.b32.xlu0 %v547_v61, %s842_s6 }
  0xd3   : > { %551 = vrot.lane.b32.xlu1 %v548_v62, %s842_s6 }
  0xd4   : > { %v362_v0 = vpop.permute.xlu2 %361  ;;  %v310_v1 = vpop.permute.xlu0 %309 }
  0xd5   : > { %368 = vst.msk [vmem:[#allocation2 + $0x48] sm:$0x70] %vm226_vm10, %v362_v0  ;;  %v312_v2 = vsel %vm311_vm11, %v308_v43, %v310_v1  ;;  %vm399_vm11 = vcmask 687104  }
  0xd6   : > { %315 = vst [vmem:[#allocation2 + $0x30] sm:$0x38] %v312_v2 }
  0xd7   : > { %v562_v7 = vld.sshfl [vmem:[#allocation1] sm:$0xff pattern:$0x75316420]  ;;  %316 = vst.msk [vmem:[#allocation2 + $0x38] sm:$0x38] %vm170_vm14, %v310_v1 }
  0xd8   : > { %v563_v14 = vld.sshfl [vmem:[#allocation1 + $0x8] sm:$0xff pattern:$0x75316420] }
  0xda   : > { %217 = vrot.lane.b32.xlu2 %v894_v16, %s843_s7  ;;  %564 = vrot.lane.b32.xlu0 %v562_v7, %s844_s8 }
  0xdb   : > { %202 = vrot.lane.b32.xlu1 %v199_v8, %s845_s11 }
  0xdc   : > { %v325_v3 = vpop.permute.xlu0 %324  ;;  %v327_v9 = vpop.permute.xlu1 %326 }
  0xdd   : > { %v329_v10 = vsel %vm328_vm15, %v325_v3, %v327_v9  ;;  %333 = vst.msk [vmem:[#allocation2 + $0x38] sm:$0xc0] %vm188_vm0, %v327_v9  ;;  %vm431_vm15 = vcmask 547840  }
  0xde   : > { %332 = vst [vmem:[#allocation2 + $0x30] sm:$0xc0] %v329_v10 }
  0xdf   : > { %334 = vst [vmem:[#allocation2 + $0x40] sm:$0x1] %v329_v10 }
  0xe0   : > { %335 = vst.msk [vmem:[#allocation2 + $0x48] sm:$0x1] %vm191_vm1, %v327_v9 }
  0xe2   : > { %163 = vrot.lane.b32.xlu2 %v160_v11, %s846_s12  ;;  %566 = vrot.lane.b32.xlu0 %v563_v14, %s844_s8 }
  0xe3   : > { %161 = vrot.lane.b32.xlu1 %v159_v12, %s846_s12 }
  0xe4   : > { %v396_v16 = vpop.permute.xlu2 %395  ;;  %v346_v15 = vpop.permute.xlu0 %345  ;;  %v585_v14 = vld [vmem:[#allocation2 + $0x38] sm:$0xff] }
  0xe5   : > { %v348_v18 = vsel %vm347_vm5, %v344_v54, %v346_v15  ;;  %352 = vst.msk [vmem:[#allocation2 + $0x48] sm:$0xe] %vm209_vm4, %v346_v15  ;;  %vm448_vm5 = vcmask 539648   ;;  %v584_v12 = vld [vmem:[#allocation2 + $0x30] sm:$0xff]  ;;  %v582_v15 = vld [vmem:[#allocation2 + $0x20] sm:$0xff] }
  0xe6   : > { %351 = vst [vmem:[#allocation2 + $0x40] sm:$0xe] %v348_v18 }
  0xea   : > { %200 = vrot.lane.b32.xlu0 %v198_v6, %s845_s11  ;;  %v360_v5 = vpop.permute.xlu1 %359 }
  0xeb   : > { %v364_v19 = vsel %vm363_vm7, %v360_v5, %v362_v0  ;;  %vm465_vm7 = vcmask 531456  }
  0xec   : > { %v415_v20 = vpop.permute.xlu2 %414  ;;  %367 = vst [vmem:[#allocation2 + $0x40] sm:$0x70] %v364_v19  ;;  %v576_v19 = vld [vmem:[%s985_s1 + $0x10] sm:$0xff] }
  0xed   : > { %421 = vst.msk [vmem:[#allocation2 + $0x58] sm:$0xe0] %vm283_vm6, %v415_v20 }
  0xf2   : > { %219 = vrot.lane.b32.xlu0 %v896_v17, %s843_s7 }
  0xf4   : > { %v428_v21 = vpop.permute.xlu2 %427  ;;  %v377_v22 = vpop.permute.xlu0 %376 }
  0xf5   : > { %v379_v23 = vpop.permute.xlu1 %378 }
  0xf6   : > { %v381_v24 = vsel %vm380_vm8, %v377_v22, %v379_v23  ;;  %385 = vst.msk [vmem:[#allocation2 + $0x48] sm:$0x80] %vm244_vm2, %v379_v23  ;;  %vm484_vm8 = vcmask 523264   ;;  %v577_v22 = vld [vmem:[%s985_s1 + $0x18] sm:$0x3f] }
  0xf7   : > { %384 = vst [vmem:[#allocation2 + $0x40] sm:$0x80] %v381_v24 }
  0xf8   : > { %386 = vst [vmem:[#allocation2 + $0x50] sm:$0x3] %v381_v24 }
  0xf9   : > { %387 = vst.msk [vmem:[#allocation2 + $0x58] sm:$0x3] %vm247_vm3, %v379_v23  ;;  %v575_v23 = vld [vmem:[%s985_s1 + $0x8] sm:$0xff] }
  0xfc   : > { %v447_v13 = vpop.permute.xlu2 %446  ;;  %v398_v25 = vpop.permute.xlu0 %397 }
  0xfd   : > { %453 = vst.msk [vmem:[#allocation2 + $0x68] sm:$0x38] %vm170_vm14, %v447_v13  ;;  %v400_v26 = vsel %vm399_vm11, %v396_v16, %v398_v25  ;;  %vm536_vm11 = vcmask 375808   ;;  %v587_v10 = vld [vmem:[#allocation2 + $0x48] sm:$0xff] }
  0xfe   : > { %403 = vst [vmem:[#allocation2 + $0x50] sm:$0x1c] %v400_v26  ;;  %v586_v11 = vld [vmem:[#allocation2 + $0x40] sm:$0xff]  ;;  %v583_v16 = vld [vmem:[#allocation2 + $0x28] sm:$0xff] }
  0xff   : > { %404 = vst.msk [vmem:[#allocation2 + $0x58] sm:$0x1c] %vm265_vm9, %v398_v25 }
 0x104   : > { %v462_v17 = vpop.permute.xlu2 %461  ;;  %v413_v27 = vpop.permute.xlu1 %412 }
 0x105   : > { %v417_v28 = vsel %vm416_vm13, %v413_v27, %v415_v20  ;;  %vm500_vm13 = vcmask 392192  }
 0x106   : > { %420 = vst [vmem:[#allocation2 + $0x50] sm:$0xe0] %v417_v28  ;;  %v589_v8 = vld [vmem:[#allocation2 + $0x58] sm:$0xff] }
 0x10a   : > { %v430_v29 = vpop.permute.xlu0 %429 }
 0x10b   : > { %v432_v30 = vsel %vm431_vm15, %v428_v21, %v430_v29  ;;  %436 = vst.msk [vmem:[#allocation2 + $0x68] sm:$0x7] %vm152_vm12, %v430_v29  ;;  %v574_v21 = vld [vmem:[%s985_s1] sm:$0xff] }
 0x10c   : > { %v483_v31 = vpop.permute.xlu2 %482  ;;  %435 = vst [vmem:[#allocation2 + $0x60] sm:$0x7] %v432_v30 }
 0x10d   : > { %489 = vst.msk [vmem:[#allocation2 + $0x78] sm:$0xe] %vm209_vm4, %v483_v31  ;;  %v588_v9 = vld [vmem:[#allocation2 + $0x50] sm:$0xff] }
 0x114   : > { %v445_v32 = vpop.permute.xlu1 %444 }
 0x115   : > { %v449_v33 = vsel %vm448_vm5, %v445_v32, %v447_v13 }
 0x116   : > { %452 = vst [vmem:[#allocation2 + $0x60] sm:$0x38] %v449_v33 }
 0x11c   : > { %v464_v34 = vpop.permute.xlu0 %463 }
 0x11d   : > { %v466_v35 = vsel %vm465_vm7, %v462_v17, %v464_v34  ;;  %470 = vst.msk [vmem:[#allocation2 + $0x68] sm:$0xc0] %vm188_vm0, %v464_v34  ;;  %vm517_vm0 = vcmask 384000  }
 0x11e   : > { %469 = vst [vmem:[#allocation2 + $0x60] sm:$0xc0] %v466_v35 }
 0x11f   : > { %471 = vst [vmem:[#allocation2 + $0x70] sm:$0x1] %v466_v35 }
 0x120   : > { %472 = vst.msk [vmem:[#allocation2 + $0x78] sm:$0x1] %vm191_vm1, %v464_v34  ;;  %vm553_vm1 = vcmask 367616  }
 0x124   : > { %v533_v36 = vpop.permute.xlu2 %532  ;;  %v481_v37 = vpop.permute.xlu1 %480  ;;  %v591_v2 = vld [vmem:[#allocation2 + $0x68] sm:$0xff] }
 0x125   : > { %v485_v38 = vsel %vm484_vm8, %v481_v37, %v483_v31  ;;  %v590_v4 = vld [vmem:[#allocation2 + $0x60] sm:$0xff] }
 0x126   : > { %488 = vst [vmem:[#allocation2 + $0x70] sm:$0xe] %v485_v38 }
 0x12a   : > { %v497_v39 = vpop.permute.xlu0 %496 }
 0x12c   : > { %v535_v40 = vpop.permute.xlu2 %534  ;;  %v499_v41 = vpop.permute.xlu1 %498 }
 0x12d   : > { %v537_v42 = vsel %vm536_vm11, %v533_v36, %v535_v40  ;;  %541 = vst.msk [vmem:[#allocation2 + $0x88] sm:$0x1c] %vm265_vm9, %v535_v40  ;;  %v501_v43 = vsel %vm500_vm13, %v497_v39, %v499_v41  ;;  %vm568_vm9 = vcmask 359424  }
 0x12e   : > { %540 = vst [vmem:[#allocation2 + $0x80] sm:$0x1c] %v537_v42 }
 0x12f   : > { %505 = vst.msk [vmem:[#allocation2 + $0x78] sm:$0x70] %vm226_vm10, %v499_v41 }
 0x130   : > { %504 = vst [vmem:[#allocation2 + $0x70] sm:$0x70] %v501_v43 }
 0x134   : > { %v218_v44 = vpop.permute.xlu2 %217  ;;  %v514_v45 = vpop.permute.xlu1 %513 }
 0x13c   : > { %v164_v46 = vpop.permute.xlu2 %163  ;;  %v516_v47 = vpop.permute.xlu1 %515 }
 0x13d   : > { %171 = vst.msk [vmem:[#allocation2 + $0x8] sm:$0x38] %vm170_vm14, %v164_v46  ;;  %v518_v48 = vsel %vm517_vm0, %v514_v45, %v516_v47  ;;  %vm165_vm14 = vcmask 1039360  }
 0x13e   : > { %521 = vst [vmem:[#allocation2 + $0x70] sm:$0x80] %v518_v48 }
 0x13f   : > { %522 = vst.msk [vmem:[#allocation2 + $0x78] sm:$0x80] %vm244_vm2, %v516_v47  ;;  %vm204_vm2 = vcmask 1022976  }
 0x140   : > { %523 = vst [vmem:[#allocation2 + $0x80] sm:$0x3] %v518_v48 }
 0x141   : > { %524 = vst.msk [vmem:[#allocation2 + $0x88] sm:$0x3] %vm247_vm3, %v516_v47  ;;  %vm611_vm3 = vcmask 1042432  }
 0x144   : > { %v550_v49 = vpop.permute.xlu0 %549  ;;  %v579_v5 = vld [vmem:[#allocation2 + $0x8] sm:$0xff] }
 0x145   : > { %v552_v50 = vpop.permute.xlu1 %551  ;;  %v592_v1 = vld [vmem:[#allocation2 + $0x70] sm:$0xff] }
 0x146   : > { %v554_v51 = vsel %vm553_vm1, %v550_v49, %v552_v50  ;;  %558 = vst.msk [vmem:[#allocation2 + $0x88] sm:$0xe0] %vm283_vm6, %v552_v50  ;;  %v593_v0 = vld [vmem:[#allocation2 + $0x78] sm:$0xff]  ;;  %vm221_vm6 = vcmask 1014784  }
 0x147   : > { %557 = vst [vmem:[#allocation2 + $0x80] sm:$0xe0] %v554_v51 }
 0x14c   : > { %v565_v52 = vpop.permute.xlu0 %564 }
 0x14d   : > { %v203_v53 = vpop.permute.xlu1 %202  ;;  %v595_v62 = vld [vmem:[#allocation2 + $0x88] sm:$0xff] }
 0x14e   : > { %210 = vst.msk [vmem:[#allocation2 + $0x18] sm:$0xe] %vm209_vm4, %v203_v53  ;;  %v594_v63 = vld [vmem:[#allocation2 + $0x80] sm:$0xff]  ;;  %vm684_vm4 = vcmask 259072  }
 0x154   : > { %v567_v54 = vpop.permute.xlu0 %566 }
 0x155   : > { %v569_v55 = vsel %vm568_vm9, %v565_v52, %v567_v54  ;;  %573 = vst.msk [vmem:[#allocation2 + $0x98] sm:$0x7] %vm152_vm12, %v567_v54  ;;  %v162_v56 = vpop.permute.xlu1 %161  ;;  %vm677_vm12 = vcmask 261120  }
 0x156   : > { %572 = vst [vmem:[#allocation2 + $0x90] sm:$0x7] %v569_v55  ;;  %v166_v57 = vsel %vm165_vm14, %v162_v56, %v164_v46 }
 0x157   : > { %169 = vst [vmem:[#allocation2] sm:$0x38] %v166_v57 }
 0x15c   : > { %v201_v58 = vpop.permute.xlu0 %200  ;;  %v597_v59 = vld [vmem:[#allocation2 + $0x98] sm:$0x7] }
 0x15d   : > { %v205_v60 = vsel %vm204_vm2, %v201_v58, %v203_v53  ;;  %754 = vmatpush.msk.msra.mxu1 %vm611_vm3, %v597_v59  ;;  %772 = vmatpush.msk.msra.mxu3 %vm611_vm3, %v597_v59  ;;  %v596_v61 = vld [vmem:[#allocation2 + $0x90] sm:$0x7] }
 0x15e   : > { %208 = vst [vmem:[#allocation2 + $0x10] sm:$0xe] %v205_v60  ;;  %749 = vmatpush.msk.msra.mxu0 %vm611_vm3, %v596_v61  ;;  %762 = vmatpush.msk.msra.mxu2 %vm611_vm3, %v596_v61  ;;  %v578_v20 = vld [vmem:[#allocation2] sm:$0xff] }
 0x15f   : > { %654 = vmatpush.msra.mxu1 %v595_v62  ;;  %773 = vmatpush.msra.mxu3 %v595_v62 }
 0x160   : > { %625 = vmatpush.msra.mxu0 %v594_v63  ;;  %763 = vmatpush.msra.mxu2 %v594_v63 }
 0x161   : > { %655 = vmatpush.msra.mxu1 %v593_v0  ;;  %774 = vmatpush.msra.mxu3 %v593_v0 }
 0x162   : > { %626 = vmatpush.msra.mxu0 %v592_v1  ;;  %764 = vmatpush.msra.mxu2 %v592_v1 }
 0x163   : > { %656 = vmatpush.msra.mxu1 %v591_v2  ;;  %775 = vmatpush.msra.mxu3 %v591_v2 }
 0x164   : > { %v220_v7 = vpop.permute.xlu0 %219  ;;  %627 = vmatpush.msra.mxu0 %v590_v4  ;;  %765 = vmatpush.msra.mxu2 %v590_v4 }
 0x165   : > { %v222_v3 = vsel %vm221_vm6, %v218_v44, %v220_v7  ;;  %227 = vst.msk [vmem:[#allocation2 + $0x18] sm:$0x70] %vm226_vm10, %v220_v7  ;;  %657 = vmatpush.msra.mxu1 %v589_v8  ;;  %776 = vmatpush.msra.mxu3 %v589_v8  ;;  %vm598_vm10 = vcmask 613376  }
 0x166   : > { %225 = vst [vmem:[#allocation2 + $0x10] sm:$0x70] %v222_v3  ;;  %628 = vmatpush.msra.mxu0 %v588_v9  ;;  %766 = vmatpush.msra.mxu2 %v588_v9 }
 0x167   : > { %658 = vmatpush.msra.mxu1 %v587_v10  ;;  %777 = vmatpush.msra.mxu3 %v587_v10 }
 0x168   : > { %629 = vmatpush.msra.mxu0 %v586_v11  ;;  %767 = vmatpush.msra.mxu2 %v586_v11 }
 0x169   : > { %659 = vmatpush.msra.mxu1 %v585_v14  ;;  %778 = vmatpush.msra.mxu3 %v585_v14 }
 0x16a   : > { %630 = vmatpush.msra.mxu0 %v584_v12  ;;  %768 = vmatpush.msra.mxu2 %v584_v12 }
 0x16b   : > { %660 = vmatpush.msra.mxu1 %v583_v16  ;;  %779 = vmatpush.msra.mxu3 %v583_v16 }
 0x16c   : > { %631 = vmatpush.msra.mxu0 %v582_v15  ;;  %769 = vmatpush.msra.mxu2 %v582_v15  ;;  %v581_v18 = vld [vmem:[#allocation2 + $0x18] sm:$0xff] }
 0x16d   : > { %661 = vmatpush.msra.mxu1 %v581_v18  ;;  %780 = vmatpush.msra.mxu3 %v581_v18  ;;  %v580_v6 = vld [vmem:[#allocation2 + $0x10] sm:$0xff] }
 0x16e   : > { %632 = vmatpush.msra.mxu0 %v580_v6  ;;  %770 = vmatpush.msra.mxu2 %v580_v6 }
 0x16f   : > { %662 = vmatpush.msra.mxu1 %v579_v5  ;;  %781 = vmatpush.msra.mxu3 %v579_v5 }
 0x170   : > { %633 = vmatpush.msra.mxu0 %v578_v20  ;;  %771 = vmatpush.msra.mxu2 %v578_v20 }
 0x171   : > { %752 = vmatmul.msk.f32.vlgmr.msra.gmra.mxu2 %vm598_vm10, %v576_v19  ;;  %757 = vmatmul.msk.f32.vlgmr.msra.gmra.mxu3 %vm598_vm10, %v576_v19 }
 0x172   : > { %750 = vmatmul.msk.f32.vlgmr.msra.gmra.mxu0 %vm598_vm10, %v574_v21  ;;  %755 = vmatmul.msk.f32.vlgmr.msra.gmra.mxu1 %vm598_vm10, %v574_v21 }
 0x179   : > { %753 = vmatmul.msk.f32.gmra.mxu2 %vm598_vm10, %v577_v22  ;;  %758 = vmatmul.msk.f32.gmra.mxu3 %vm598_vm10, %v577_v22 }
 0x17a   : > { %751 = vmatmul.msk.f32.gmra.mxu0 %vm598_vm10, %v575_v23  ;;  %756 = vmatmul.msk.f32.gmra.mxu1 %vm598_vm10, %v575_v23 }
 0x1ef   : > { %v635_v24 = vpop.f32.mrf.mxu0  ;;  %v664_v13 = vpop.f32.mrf.mxu1 }
 0x1f0   : > { %676 = vst [vmem:[%s143_s24] sm:$0xff] %v635_v24 }
 0x1f1   : > { %678 = vst.msk [vmem:[%s143_s24 + $0x8] sm:$0xff] %vm677_vm12, %v664_v13 }
 0x1f4   : > { %v641_v25 = vpop.f32.mrf.mxu2  ;;  %v670_v26 = vpop.f32.mrf.mxu3 }
 0x1f5   : > { %681 = vst [vmem:[%s143_s24 + $0x20] sm:$0xff] %v641_v25 }
 0x1f6   : > { %682 = vst.msk [vmem:[%s143_s24 + $0x28] sm:$0xff] %vm677_vm12, %v670_v26 }
 0x1f7   : > { %v638_v17 = vpop.f32.mrf.mxu0  ;;  %v667_v27 = vpop.f32.mrf.mxu1 }
 0x1f8   : > { %679 = vst [vmem:[%s143_s24 + $0x10] sm:$0xff] %v638_v17 }
 0x1f9   : > { %680 = vst.msk [vmem:[%s143_s24 + $0x18] sm:$0xff] %vm677_vm12, %v667_v27 }
 0x1fc   : > { %v644_v28 = vpop.f32.mrf.mxu2  ;;  %v673_v29 = vpop.f32.mrf.mxu3 }
 0x1fd   : > { %683 = vst [vmem:[%s143_s24 + $0x30] sm:$0x3f] %v644_v28 }
 0x1fe   : > { %685 = vst.msk [vmem:[%s143_s24 + $0x38] sm:$0x3f] %vm684_vm4, %v673_v29 }
 0x1ff PF: > { %s12_s9 = sadd.s32 1, %s821_s9  }
 0x200   : > { %p9_p4 = scmp.ge.s32.totalorder %s12_s9, 6  }
 0x202   :  { %11 = sbr.rel (!%p9_p4) target bundleno = 1 (0x1), region = 61 }

</bundles_post_ra>
